<compile_context>
chip_gen: v5e
topology: v5e:2x2
jax: 0.10.0
libtpu: 0.0.40
codegen_flags: <defaults>
</compile_context>

<pallas_src>
import functools

import jax
import jax.numpy as jnp
from jax.experimental import pallas as pl
from jax.experimental.pallas import tpu as pltpu


def pack_params(w1, b1, w2, b2):
    """Pack fc1/fc2 params into one f32 buffer.  Call ONCE at init.

    Expects weights already in (in, out) layout (i.e. PyTorch nn.Linear
    weights transposed once at load time).

    Layout, with H = hidden, O = 31, W = max(H, O) lanes:
      rows 0   .. H-1   : W1  (H, H), zero-padded in lanes to W
      rows H   .. 2H-1  : W2  (H, O), zero-padded in lanes to W
      row  2H           : b1  (H,),   zero-padded to W
      row  2H+1         : b2  (O,),   zero-padded to W
    """
    H = w1.shape[0]
    O = w2.shape[1]
    W = max(H, O)
    packed = jnp.zeros((2 * H + 2, W), jnp.float32)
    packed = packed.at[0:H, 0:H].set(w1.astype(jnp.float32))
    packed = packed.at[H:2 * H, 0:O].set(w2.astype(jnp.float32))
    packed = packed.at[2 * H, 0:H].set(b1.astype(jnp.float32))
    packed = packed.at[2 * H + 1, 0:O].set(b2.astype(jnp.float32))
    return packed


def next_region_predictor_kernel(h_ref, p_ref, o_ref, *, H, O):
    # Two small whole-array VMEM loads; everything else is register-level.
    h = h_ref[...]            # (B, H)
    P = p_ref[...]            # (2H+2, W) packed params

    w1 = P[0:H, 0:H]                      # (H, H)
    w2 = P[H:2 * H, :]                    # (H, W) — padded cols are zero
    b1 = P[2 * H:2 * H + 1, 0:H]          # (1, H)
    b2 = P[2 * H + 1:2 * H + 2, :]        # (1, W) — padded cols are zero

    # fc1 + LeakyReLU (PyTorch default negative_slope = 0.01)
    z1 = jnp.dot(h, w1, preferred_element_type=jnp.float32) + b1
    a1 = jnp.maximum(z1, 0.01 * z1)

    # fc2 (logits, no activation — matches the PyTorch module)
    z2 = jnp.dot(a1, w2, preferred_element_type=jnp.float32) + b2  # (B, W)
    o_ref[...] = z2[:, 0:O].astype(o_ref.dtype)


def next_region_predictor(h, packed_params, *, out_size=31):
    """h: (B, H) f32; packed_params: output of pack_params (2H+2, W) f32."""
    B, H = h.shape
    O = out_size
    W = packed_params.shape[1]

    vmem = pl.BlockSpec(memory_space=pltpu.MemorySpace.VMEM)
    flops = 2 * B * H * H + 2 * B * H * W          # two MXU matmuls
    bytes_accessed = 4 * (h.size + packed_params.size + B * O)

    return pl.pallas_call(
        functools.partial(next_region_predictor_kernel, H=H, O=O),
        out_shape=jax.ShapeDtypeStruct((B, O), jnp.float32),
        in_specs=[vmem, vmem],
        out_specs=vmem,
        cost_estimate=pl.CostEstimate(
            flops=flops, transcendentals=0, bytes_accessed=bytes_accessed),
    )(h, packed_params)


def reference(h, w1, b1, w2, b2):
    z1 = h @ w1 + b1.reshape(1, -1)
    a1 = jnp.where(z1 >= 0.0, z1, 0.01 * z1)
    return a1 @ w2 + b2.reshape(1, -1)


if __name__ == "__main__":
    hidden_size = 32
    out_size = 31
    batch = 8

    key = jax.random.PRNGKey(0)
    k_h, k_w1, k_b1, k_w2, k_b2 = jax.random.split(key, 5)

    # Deterministic synthetic init (roughly PyTorch-scale uniform).
    # Weights are generated directly in (in, out) layout — in a real port this
    # is nn.Linear.weight.T, transposed once at parameter-load time.
    bound = 1.0 / (hidden_size ** 0.5)
    h = jax.random.normal(k_h, (batch, hidden_size), dtype=jnp.float32)
    w1 = jax.random.uniform(k_w1, (hidden_size, hidden_size),
                            minval=-bound, maxval=bound, dtype=jnp.float32)
    b1 = jax.random.uniform(k_b1, (hidden_size,),
                            minval=-bound, maxval=bound, dtype=jnp.float32)
    w2 = jax.random.uniform(k_w2, (hidden_size, out_size),
                            minval=-bound, maxval=bound, dtype=jnp.float32)
    b2 = jax.random.uniform(k_b2, (out_size,),
                            minval=-bound, maxval=bound, dtype=jnp.float32)

    # Pack once (init time), reuse across all calls.
    packed = jax.block_until_ready(pack_params(w1, b1, w2, b2))

    out = next_region_predictor(h, packed, out_size=out_size)
    out = jax.block_until_ready(out)

    ref = reference(h, w1, b1, w2, b2)
    assert out.shape == (batch, out_size), out.shape
    assert jnp.allclose(out, ref, atol=1e-5, rtol=1e-5), (out, ref)

    print("KERNEL_OK")
</pallas_src>

<mosaic_0001>
module attributes {stable_mosaic.version = 11 : i64} {
  func.func @next_region_predictor_kernel(%arg0: memref<8x32xf32, #tpu.memory_space<vmem>>, %arg1: memref<66x32xf32, #tpu.memory_space<vmem>>, %arg2: memref<8x31xf32, #tpu.memory_space<vmem>>) attributes {dimension_semantics = [], scalar_prefetch = 0 : i64, scratch_operands = 0 : i64, tpu.core_type = #tpu.core_type<tc>} {
    %c0 = arith.constant 0 : index
    %c0_0 = arith.constant 0 : index
    %0 = vector.load %arg0[%c0, %c0_0] : memref<8x32xf32, #tpu.memory_space<vmem>>, vector<8x32xf32>
    %c0_1 = arith.constant 0 : index
    %c0_2 = arith.constant 0 : index
    %1 = vector.load %arg1[%c0_1, %c0_2] : memref<66x32xf32, #tpu.memory_space<vmem>>, vector<66x32xf32>
    %2 = vector.extract_strided_slice %1 {offsets = [0, 0], sizes = [32, 32], strides = [1, 1]} : vector<66x32xf32> to vector<32x32xf32>
    %3 = vector.extract_strided_slice %1 {offsets = [32, 0], sizes = [32, 32], strides = [1, 1]} : vector<66x32xf32> to vector<32x32xf32>
    %4 = vector.extract_strided_slice %1 {offsets = [64, 0], sizes = [1, 32], strides = [1, 1]} : vector<66x32xf32> to vector<1x32xf32>
    %5 = vector.extract_strided_slice %1 {offsets = [65, 0], sizes = [1, 32], strides = [1, 1]} : vector<66x32xf32> to vector<1x32xf32>
    %cst = arith.constant dense<0.000000e+00> : vector<8x32xf32>
    %6 = tpu.matmul %0, %2, %cst {dimension_numbers = #tpu.dot_dimension_numbers<[1], [0], [0], [1], [0, 0, 1, 1], [], []>} : vector<8x32xf32>, vector<32x32xf32>, vector<8x32xf32> -> vector<8x32xf32>
    %7 = vector.broadcast %4 : vector<1x32xf32> to vector<8x32xf32>
    %8 = arith.addf %6, %7 : vector<8x32xf32>
    %cst_3 = arith.constant 0.00999999977 : f32
    %9 = vector.broadcast %cst_3 : f32 to vector<8x32xf32>
    %10 = arith.mulf %9, %8 : vector<8x32xf32>
    %11 = arith.maximumf %8, %10 : vector<8x32xf32>
    %cst_4 = arith.constant dense<0.000000e+00> : vector<8x32xf32>
    %12 = tpu.matmul %11, %3, %cst_4 {dimension_numbers = #tpu.dot_dimension_numbers<[1], [0], [0], [1], [0, 0, 1, 1], [], []>} : vector<8x32xf32>, vector<32x32xf32>, vector<8x32xf32> -> vector<8x32xf32>
    %13 = vector.broadcast %5 : vector<1x32xf32> to vector<8x32xf32>
    %14 = arith.addf %12, %13 : vector<8x32xf32>
    %15 = vector.extract_strided_slice %14 {offsets = [0, 0], sizes = [8, 31], strides = [1, 1]} : vector<8x32xf32> to vector<8x31xf32>
    %c0_5 = arith.constant 0 : index
    %c0_6 = arith.constant 0 : index
    %16 = vector.load %arg2[%c0_5, %c0_6] : memref<8x31xf32, #tpu.memory_space<vmem>>, vector<8x31xf32>
    tpu.vector_store %arg2[%c0_5, %c0_6], %15 {strides = array<i32>} : memref<8x31xf32, #tpu.memory_space<vmem>>, vector<8x31xf32>,
    return
  }
}

</mosaic_0001>

<bundles_post_ra>
// kernel: tpu_custom_call.1
= control target key start
LH: loop header
LB: loop body
LE: loop exit
PB: predicated region body
PF: predicated region fallthrough
CT: control target
= control target key end

     0   :  { %s171_s0 = inlined_call_operand.vmem [shape: f32[8,32], index: 0, kind: input, shape index: {}]   ;;  %s172_s1 = inlined_call_operand.vmem [shape: f32[66,32], index: 1, kind: input, shape index: {}]   ;;  %s173_s2 = inlined_call_operand.hbm [shape: f32[8,31], index: 2, kind: output, shape index: {}]  }
   0x1   :  { %v16_v0 = vld [vmem:[%s172_s1 + $0x18] sm:$0xff]  ;;  %v15_v1 = vld [vmem:[%s172_s1 + $0x10] sm:$0xff]  ;;  %v14_v2 = vld [vmem:[%s172_s1 + $0x8] sm:$0xff] }
   0x2   :  { %39 = vmatpush.msra.mxu0 %v16_v0 }
   0x3   :  { %7 = vsyncpa [#allocation3], 0  ;;  %v13_v3 = vld [vmem:[%s172_s1] sm:$0xff]  ;;  %vm23_vm0 = vcmask 261120   ;;  %v20_v5 = vld [vmem:[%s172_s1 + $0x38] sm:$0xff]  ;;  %s120_s28 = smov [#allocation2]  }
   0x4   :  { %40 = vmatpush.msra.mxu0 %v15_v1  ;;  %v12_v4 = vld [vmem:[%s171_s0] sm:$0xff]  ;;  %65 = vmatpush.msra.mxu1 %v20_v5  ;;  %v19_v6 = vld [vmem:[%s172_s1 + $0x30] sm:$0xff]  ;;  %v18_v7 = vld [vmem:[%s172_s1 + $0x28] sm:$0xff]  ;;  %s80_s29 = sshll.u32 %s120_s28, 4  ;;  %s82_s4 = sshll.u32 %s173_s2, 4  ;;  %vm73_vm1 = vcmask 252928   ;;  %s81_s29 = int_to_ptr.vmem [resolvable:$true] %s80_s29  ;;  %s83_s4 = int_to_ptr.hbm [resolvable:$true] %s82_s4 }
   0x5   :  { %v17_v8 = vld [vmem:[%s172_s1 + $0x20] sm:$0xff] }
   0x6   :  { %41 = vmatpush.msra.mxu0 %v14_v2  ;;  %66 = vmatpush.msra.mxu1 %v19_v6  ;;  %v21_v9 = vld [vmem:[%s172_s1 + $0x40] sm:$0x3] }
   0x7   :  { %v22_v10 = vperm.slane %v21_v9, 0  ;;  %v49_v15 = vperm.slane %v21_v9, 1 }
   0x8   :  { %42 = vmatpush.msra.mxu0 %v13_v3  ;;  %67 = vmatpush.msra.mxu1 %v18_v7 }
   0x9   :  { %91 = vmatmul.msk.f32.vlgmr.msra.gmra.mxu0 %vm23_vm0, %v12_v4 }
   0xa   :  { %68 = vmatpush.msra.mxu1 %v17_v8 }
  0x86   :  { %v44_v11 = vpop.f32.mrf.mxu0 }
  0x87   :  { %v45_v12 = vadd.f32 %v44_v11, %v22_v10 }
  0x89   :  { %v47_v13 = vmul.f32 0.01, %v45_v12 }
  0x8b   :  { %v48_v14 = vmax.f32 %v45_v12, %v47_v13 }
  0x8d   :  { %92 = vmatmul.msk.f32.vlgmr.msra.gmra.mxu1 %vm23_vm0, %v48_v14 }
 0x10a   :  { %v70_v16 = vpop.f32.mrf.mxu1 }
 0x10b   :  { %v71_v17 = vadd.f32 %v70_v16, %v49_v15 }
 0x10d   :  { %74 = vst.msk [vmem:[#allocation2] sm:$0xff] %vm73_vm1, %v71_v17 }
 0x10e   :  { %85 = dma.vmem_to_hbm [thread:$0]  %s81_s29, 128, %s83_s4, [#allocation3]  }
 0x10f   :  { %118 = dma.done.wait [#allocation3], 128  }
 0x110   :  { %119 = vsyncadd [#allocation3], 4294967168 }
 0x111   :  { %90 = vsyncpa [#allocation3], 1 }

</bundles_post_ra>
